<compile_context>
chip_gen: v7x
topology: tpu7x:2x2x1
jax: 0.10.0
libtpu: 0.0.40
codegen_flags: <defaults>
</compile_context>

<pallas_src>
import jax
import jax.numpy as jnp
from jax.experimental import pallas as pl
from jax.experimental.pallas import tpu as pltpu

ACTION_SIZE = 4
D_IN = 12
D_HIDDEN = 100

# Padded, lane/sublane-friendly sizes.
D_IN_AUG = 16          # 12 features + ones column (bias carrier) + 3 zero pad
D_HID_PAD = 128        # 100 hidden units + zero pad; lane 127 is the "ones lane"
D_OUT_PAD = 128        # 4 actions + zero pad (lane-dense output store)
_BIAS_COL = D_IN       # column 12 of x_aug is constantly 1.0
_ONES_LANE = D_HID_PAD - 1  # hidden lane 127 is constantly 1.0 after ReLU

TILE_B = 256           # batch tile for the gridded (large-batch) path


def qnet_kernel(x_ref, w1_ref, w2_ref, o_ref):
    # x_ref : (B, 16)    rows = [features(12), 1, 0, 0, 0]
    # w1_ref: (16, 128)  cols 0..99 = [W1; b1; 0-pad], col 127 = e_12 -> h[:,127] == 1
    # w2_ref: (128, 128) rows 0..99 = W2, row 127 = b2, cols 4..127 = 0
    # o_ref : (B, 128)   cols 0..3 = Q-values, cols 4..127 = 0
    h = jnp.maximum(
        jnp.dot(x_ref[...], w1_ref[...], preferred_element_type=jnp.float32), 0.0
    )
    o_ref[...] = jnp.dot(h, w2_ref[...], preferred_element_type=jnp.float32)


def prepare_params(w1, b1, w2, b2):
    """Fold biases into zero-padded, lane-dense weight matrices (done once)."""
    w1 = jnp.asarray(w1, jnp.float32).reshape(D_IN, D_HIDDEN)
    b1 = jnp.asarray(b1, jnp.float32).reshape(D_HIDDEN)
    w2 = jnp.asarray(w2, jnp.float32).reshape(D_HIDDEN, ACTION_SIZE)
    b2 = jnp.asarray(b2, jnp.float32).reshape(ACTION_SIZE)

    w1_aug = jnp.zeros((D_IN_AUG, D_HID_PAD), jnp.float32)
    w1_aug = w1_aug.at[:D_IN, :D_HIDDEN].set(w1)
    w1_aug = w1_aug.at[_BIAS_COL, :D_HIDDEN].set(b1)    # bias via the ones column of x
    w1_aug = w1_aug.at[_BIAS_COL, _ONES_LANE].set(1.0)  # keeps hidden lane 127 == 1

    w2_aug = jnp.zeros((D_HID_PAD, D_OUT_PAD), jnp.float32)
    w2_aug = w2_aug.at[:D_HIDDEN, :ACTION_SIZE].set(w2)
    w2_aug = w2_aug.at[_ONES_LANE, :ACTION_SIZE].set(b2)  # bias via the ones lane of h
    return w1_aug, w2_aug


def qnet_forward(x, w1_aug, w2_aug):
    x = jnp.asarray(x, jnp.float32)
    B = x.shape[0]
    B_pad = max(8, ((B + 7) // 8) * 8)

    # Augment x with the ones column and pad rows to a sublane multiple.
    x_aug = jnp.zeros((B_pad, D_IN_AUG), jnp.float32)
    x_aug = x_aug.at[:B, :D_IN].set(x)
    x_aug = x_aug.at[:, _BIAS_COL].set(1.0)

    if B_pad <= TILE_B:
        # Tiny problem: single invocation, no grid, no pipelining machinery.
        out = pl.pallas_call(
            qnet_kernel,
            out_shape=jax.ShapeDtypeStruct((B_pad, D_OUT_PAD), jnp.float32),
            in_specs=[pl.BlockSpec(memory_space=pltpu.MemorySpace.VMEM)] * 3,
            out_specs=pl.BlockSpec(memory_space=pltpu.MemorySpace.VMEM),
        )(x_aug, w1_aug, w2_aug)
    else:
        # Batched path: tile the batch with a parallel grid axis; weights are
        # resident across grid steps (constant index_map).
        B_tiled = ((B_pad + TILE_B - 1) // TILE_B) * TILE_B
        if B_tiled != B_pad:
            x_aug = jnp.pad(x_aug, ((0, B_tiled - B_pad), (0, 0)))
        out = pl.pallas_call(
            qnet_kernel,
            out_shape=jax.ShapeDtypeStruct((B_tiled, D_OUT_PAD), jnp.float32),
            grid=(B_tiled // TILE_B,),
            in_specs=[
                pl.BlockSpec((TILE_B, D_IN_AUG), lambda i: (i, 0)),
                pl.BlockSpec((D_IN_AUG, D_HID_PAD), lambda i: (0, 0)),
                pl.BlockSpec((D_HID_PAD, D_OUT_PAD), lambda i: (0, 0)),
            ],
            out_specs=pl.BlockSpec((TILE_B, D_OUT_PAD), lambda i: (i, 0)),
            compiler_params=pltpu.CompilerParams(
                dimension_semantics=("parallel",)
            ),
        )(x_aug, w1_aug, w2_aug)

    return out[:B, :ACTION_SIZE]


def init_params(key, d_in=D_IN, d_hidden=D_HIDDEN, d_out=ACTION_SIZE):
    # Mimics PyTorch Linear's U(-1/sqrt(fan_in), 1/sqrt(fan_in)) init.
    k1, k2, k3, k4 = jax.random.split(key, 4)
    s1 = 1.0 / jnp.sqrt(d_in)
    s2 = 1.0 / jnp.sqrt(d_hidden)
    w1 = jax.random.uniform(k1, (d_in, d_hidden), jnp.float32, -s1, s1)
    b1 = jax.random.uniform(k2, (d_hidden,), jnp.float32, -s1, s1)
    w2 = jax.random.uniform(k3, (d_hidden, d_out), jnp.float32, -s2, s2)
    b2 = jax.random.uniform(k4, (d_out,), jnp.float32, -s2, s2)
    return w1, b1, w2, b2


def reference_forward(x, w1, b1, w2, b2):
    h = jnp.maximum(x @ w1 + b1, 0.0)
    return h @ w2 + b2


if __name__ == "__main__":
    key = jax.random.PRNGKey(0)
    kx, kp, kb = jax.random.split(key, 3)

    w1, b1, w2, b2 = init_params(kp)
    w1_aug, w2_aug = prepare_params(w1, b1, w2, b2)

    # Small-batch (latency) path, B=2.
    x_small = jax.random.normal(kx, (2, D_IN), jnp.float32)
    out_small = jax.block_until_ready(qnet_forward(x_small, w1_aug, w2_aug))
    ref_small = reference_forward(x_small, w1, b1, w2, b2)
    assert out_small.shape == (2, ACTION_SIZE)
    assert jnp.allclose(out_small, ref_small, atol=1e-5, rtol=1e-5)

    # Large-batch (gridded, parallel) path, B=1024.
    x_big = jax.random.normal(kb, (1024, D_IN), jnp.float32)
    out_big = jax.block_until_ready(qnet_forward(x_big, w1_aug, w2_aug))
    ref_big = reference_forward(x_big, w1, b1, w2, b2)
    assert out_big.shape == (1024, ACTION_SIZE)
    assert jnp.allclose(out_big, ref_big, atol=1e-4, rtol=1e-4)

    print("KERNEL_OK")
</pallas_src>

<mosaic_0001>
module attributes {stable_mosaic.version = 11 : i64} {
  func.func @qnet_kernel(%arg0: memref<8x16xf32, #tpu.memory_space<vmem>>, %arg1: memref<16x128xf32, #tpu.memory_space<vmem>>, %arg2: memref<128x128xf32, #tpu.memory_space<vmem>>, %arg3: memref<8x128xf32, #tpu.memory_space<vmem>>) attributes {dimension_semantics = [], scalar_prefetch = 0 : i64, scratch_operands = 0 : i64, tpu.core_type = #tpu.core_type<tc>} {
    %c0 = arith.constant 0 : index
    %c0_0 = arith.constant 0 : index
    %0 = vector.load %arg0[%c0, %c0_0] : memref<8x16xf32, #tpu.memory_space<vmem>>, vector<8x16xf32>
    %c0_1 = arith.constant 0 : index
    %c0_2 = arith.constant 0 : index
    %1 = vector.load %arg1[%c0_1, %c0_2] : memref<16x128xf32, #tpu.memory_space<vmem>>, vector<16x128xf32>
    %cst = arith.constant dense<0.000000e+00> : vector<8x128xf32>
    %2 = tpu.matmul %0, %1, %cst {dimension_numbers = #tpu.dot_dimension_numbers<[1], [0], [0], [1], [0, 0, 1, 1], [], []>} : vector<8x16xf32>, vector<16x128xf32>, vector<8x128xf32> -> vector<8x128xf32>
    %cst_3 = arith.constant 0.000000e+00 : f32
    %3 = vector.broadcast %cst_3 : f32 to vector<8x128xf32>
    %4 = arith.maximumf %2, %3 : vector<8x128xf32>
    %c0_4 = arith.constant 0 : index
    %c0_5 = arith.constant 0 : index
    %5 = vector.load %arg2[%c0_4, %c0_5] : memref<128x128xf32, #tpu.memory_space<vmem>>, vector<128x128xf32>
    %cst_6 = arith.constant dense<0.000000e+00> : vector<8x128xf32>
    %6 = tpu.matmul %4, %5, %cst_6 {dimension_numbers = #tpu.dot_dimension_numbers<[1], [0], [0], [1], [0, 0, 1, 1], [], []>} : vector<8x128xf32>, vector<128x128xf32>, vector<8x128xf32> -> vector<8x128xf32>
    %c0_7 = arith.constant 0 : index
    %c0_8 = arith.constant 0 : index
    %7 = vector.load %arg3[%c0_7, %c0_8] : memref<8x128xf32, #tpu.memory_space<vmem>>, vector<8x128xf32>
    tpu.vector_store %arg3[%c0_7, %c0_8], %6 {strides = array<i32>} : memref<8x128xf32, #tpu.memory_space<vmem>>, vector<8x128xf32>,
    return
  }
}

</mosaic_0001>

<bundles_post_ra>
// kernel: tpu_custom_call.1
= control target key start
LH: loop header
LB: loop body
LE: loop exit
PB: predicated region body
PF: predicated region fallthrough
CT: control target
= control target key end

     0   :  { %8 = vsyncpa [#allocation3], 0  ;;  %s511_s0 = inlined_call_operand.hbm [shape: f32[8,16], index: 0, kind: input, shape index: {}]   ;;  %s512_s1 = inlined_call_operand.hbm [shape: f32[16,128], index: 1, kind: input, shape index: {}]   ;;  %s513_s2 = inlined_call_operand.hbm [shape: f32[128,128], index: 2, kind: input, shape index: {}]   ;;  %s514_s3 = inlined_call_operand.hbm [shape: f32[8,128], index: 3, kind: output, shape index: {}]  }
   0x1   :  { %9 = vsyncpa [#allocation6], 0 }
   0x2   :  { %10 = vsyncpa [#allocation4], 0  ;;  %s428_s12 = smov [#allocation5]   ;;  %s334_s16 = scalar_lea.hbm %s512_s1, 256 }
   0x3   :  { %s26_s13 = sshll.u32 %s428_s12, 4  ;;  %p335_p0 = scmp.ne.s32.totalorder %s512_s1, %s334_s16  ;;  %s27_s13 = int_to_ptr.vmem [resolvable:$true] %s26_s13 }
   0x4   :  { %p338_p1 = scmp.lt.u32.totalorder %s334_s16, %s512_s1 }
   0x6   :  { %p340_p2 = pnand %p338_p1, %p335_p0 }
   0x8   :  { %343 = shalt.err (!%p340_p2)
}
   0x9   :  { %s344_s21 = scalar_lea.vmem %s27_s13, 256  ;;  %p349_p4 = scmp.lt.s32.totalorder %s27_s13, %s27_s13 }
   0xa   :  { %p345_p3 = scmp.ne.s32.totalorder %s27_s13, %s344_s21  ;;  %p350_p5 = scmp.lt.s32.totalorder %s344_s21, %s344_s21 }
   0xc   :  { %p351_p6 = por %p350_p5, %p349_p4 }
   0xe   :  { %p352_p7 = pnand %p351_p6, %p345_p3 }
  0x10   :  { %355 = shalt.err (!%p352_p7)
}
  0x11   :  { %s429_s22 = smov 128   ;;  %s430_s23 = smov 8  }
  0x12   :  { %32 = dma.hbm_to_vmem [thread:$0]  %s512_s1, 256, %s27_s13, [#allocation6], %s429_s22, %s429_s22, %s430_s23  }
  0x13   :  { %s431_s26 = smov [#allocation2]   ;;  %s432_s28 = smov [#allocation7]  }
  0x14   :  { %s17_s27 = sshll.u32 %s431_s26, 4  ;;  %s38_s29 = sshll.u32 %s432_s28, 4  ;;  %s18_s27 = int_to_ptr.vmem [resolvable:$true] %s17_s27  ;;  %s39_s29 = int_to_ptr.vmem [resolvable:$true] %s38_s29 }
  0x15   :  { %s356_s5 = scalar_lea.hbm %s511_s0, 128 }
  0x16   :  { %p357_p8 = scmp.ne.s32.totalorder %s511_s0, %s356_s5  ;;  %p360_p9 = scmp.lt.u32.totalorder %s356_s5, %s511_s0 }
  0x18   :  { %p362_p10 = pnand %p360_p9, %p357_p8 }
  0x1a   :  { %365 = shalt.err (!%p362_p10)
}
  0x1b   :  { %s366_s1 = scalar_lea.vmem %s18_s27, 128  ;;  %p371_p12 = scmp.lt.s32.totalorder %s18_s27, %s18_s27 }
  0x1c   :  { %p367_p11 = scmp.ne.s32.totalorder %s18_s27, %s366_s1  ;;  %p372_p13 = scmp.lt.s32.totalorder %s366_s1, %s366_s1 }
  0x1e   :  { %p373_p0 = por %p372_p13, %p371_p12 }
  0x20   :  { %p374_p1 = pnand %p373_p0, %p367_p11 }
  0x22   :  { %377 = shalt.err (!%p374_p1)
}
  0x23   :  { %20 = dma.hbm_to_vmem [thread:$0]  %s511_s0, 128, %s18_s27, [#allocation3]  }
  0x24   :  { %s378_s14 = scalar_lea.hbm %s513_s2, 2048 }
  0x25   :  { %p379_p2 = scmp.ne.s32.totalorder %s513_s2, %s378_s14  ;;  %p382_p3 = scmp.lt.u32.totalorder %s378_s14, %s513_s2 }
  0x27   :  { %p384_p4 = pnand %p382_p3, %p379_p2 }
  0x29   :  { %387 = shalt.err (!%p384_p4)
}
  0x2a   :  { %s388_s19 = scalar_lea.vmem %s39_s29, 2048  ;;  %p393_p6 = scmp.lt.s32.totalorder %s39_s29, %s39_s29 }
  0x2b   :  { %p389_p5 = scmp.ne.s32.totalorder %s39_s29, %s388_s19  ;;  %p394_p7 = scmp.lt.s32.totalorder %s388_s19, %s388_s19 }
  0x2d   :  { %p395_p8 = por %p394_p7, %p393_p6 }
  0x2f   :  { %p396_p9 = pnand %p395_p8, %p389_p5 }
  0x31   :  { %399 = shalt.err (!%p396_p9)
}
  0x32   :  { %44 = dma.hbm_to_vmem [thread:$0]  %s513_s2, 2048, %s39_s29, [#allocation6], %s429_s22, %s429_s22, %s430_s23  }
  0x33   :  { %422 = dma.done.wait [#allocation3], 128  }
  0x34   :  { %423 = vsyncadd [#allocation3], 4294967168 }
  0x35   :  { %424 = dma.done.wait [#allocation6], 2304  }
  0x36   :  { %425 = vsyncadd [#allocation6], 4294964992  ;;  %v433_v0 = vmov 0.0|0.0   ;;  %vm434_vm0 = vmmov 0   ;;  %v435_v1 = vmov 0.0   ;;  %v55_v2 = vld [vmem:[#allocation5] sm:$0xff] }
  0x37   :  { %298 = vmatprep.subr.bf16.mxu0 %v433_v0  ;;  %260 = vmatprep.mubr.msk.f32.mxu0 %vm434_vm0, %v435_v1  ;;  %v56_v3 = vld [vmem:[#allocation5 + $0x8] sm:$0xff]  ;;  %v132_v5 = vld [vmem:[#allocation7] sm:$0xff]  ;;  %v133_v6 = vld [vmem:[#allocation7 + $0x8] sm:$0xff]  ;;  %vm57_vm1 = vcmask 130048   ;;  %s436_s2 = smov [#allocation8]  }
  0x38   :  { %301 = vmatprep.subr.bf16.mxu1 %v433_v0  ;;  %295 = vmatprep.mubr.msk.f32.mxu1 %vm434_vm0, %v435_v1  ;;  %v299_v4 = vpack.c.bf16 %v56_v3, %v55_v2  ;;  %v134_v7 = vld [vmem:[#allocation7 + $0x10] sm:$0xff]  ;;  %v302_v8 = vpack.c.bf16 %v133_v6, %v132_v5  ;;  %v135_v9 = vld [vmem:[#allocation7 + $0x18] sm:$0xff]  ;;  %v54_v10 = vld [vmem:[#allocation2] sm:$0xff]  ;;  %s225_s21 = sshll.u32 %s436_s2, 4  ;;  %s226_s21 = int_to_ptr.vmem [resolvable:$true] %s225_s21 }
  0x39   :  { %v305_v11 = vpack.c.bf16 %v135_v9, %v134_v7  ;;  %v136_v12 = vld [vmem:[#allocation7 + $0x20] sm:$0xff]  ;;  %v137_v13 = vld [vmem:[#allocation7 + $0x28] sm:$0xff]  ;;  %v138_v15 = vld [vmem:[#allocation7 + $0x30] sm:$0xff]  ;;  %s400_s22 = scalar_lea.vmem %s226_s21, 128  ;;  %p405_p11 = scmp.lt.s32.totalorder %s226_s21, %s226_s21 }
  0x3a   :  { %300 = vmatpush3.bf16.msra.mxu0 %v299_v4  ;;  %303 = vmatpush3.bf16.msra.mxu1 %v302_v8  ;;  %v308_v14 = vpack.c.bf16 %v137_v13, %v136_v12  ;;  %v139_v16 = vld [vmem:[#allocation7 + $0x38] sm:$0xff]  ;;  %v140_v18 = vld [vmem:[#allocation7 + $0x40] sm:$0xff]  ;;  %v141_v19 = vld [vmem:[#allocation7 + $0x48] sm:$0xff]  ;;  %p401_p10 = scmp.ne.s32.totalorder %s226_s21, %s400_s22  ;;  %p406_p12 = scmp.lt.s32.totalorder %s400_s22, %s400_s22 }
  0x3b   :  { %304 = vmatprep.subr.bf16.mxu1 %v433_v0  ;;  %v311_v17 = vpack.c.bf16 %v139_v16, %v138_v15  ;;  %v314_v20 = vpack.c.bf16 %v141_v19, %v140_v18  ;;  %v142_v21 = vld [vmem:[#allocation7 + $0x50] sm:$0xff]  ;;  %v143_v22 = vld [vmem:[#allocation7 + $0x58] sm:$0xff]  ;;  %v144_v24 = vld [vmem:[#allocation7 + $0x60] sm:$0xff] }
  0x3c   :  { %v317_v23 = vpack.c.bf16 %v143_v22, %v142_v21  ;;  %v145_v25 = vld [vmem:[#allocation7 + $0x68] sm:$0xff]  ;;  %v146_v27 = vld [vmem:[#allocation7 + $0x70] sm:$0xff]  ;;  %v147_v28 = vld [vmem:[#allocation7 + $0x78] sm:$0xff]  ;;  %p407_p13 = por %p406_p12, %p405_p11 }
  0x3d   :  { %261 = vmatmul.mubr.msk.f32.vlgmr.msra.gmra.mrb[0].mxu0 %vm57_vm1, %v54_v10  ;;  %v320_v26 = vpack.c.bf16 %v145_v25, %v144_v24  ;;  %v323_v29 = vpack.c.bf16 %v147_v28, %v146_v27 }
  0x3e   :  { %306 = vmatpush3.bf16.msra.mxu1 %v305_v11  ;;  %p408_p0 = pnand %p407_p13, %p401_p10 }
  0x3f   :  { %307 = vmatprep.subr.bf16.mxu1 %v433_v0 }
  0x42   :  { %309 = vmatpush3.bf16.msra.mxu1 %v308_v14 }
  0x43   :  { %310 = vmatprep.subr.bf16.mxu1 %v433_v0 }
  0x46   :  { %312 = vmatpush3.bf16.msra.mxu1 %v311_v17 }
  0x47   :  { %313 = vmatprep.subr.bf16.mxu1 %v433_v0 }
  0x4a   :  { %315 = vmatpush3.bf16.msra.mxu1 %v314_v20 }
  0x4b   :  { %316 = vmatprep.subr.bf16.mxu1 %v433_v0 }
  0x4e   :  { %318 = vmatpush3.bf16.msra.mxu1 %v317_v23 }
  0x4f   :  { %319 = vmatprep.subr.bf16.mxu1 %v433_v0 }
  0x52   :  { %321 = vmatpush3.bf16.msra.mxu1 %v320_v26 }
  0x53   :  { %322 = vmatprep.subr.bf16.mxu1 %v433_v0 }
  0x56   :  { %324 = vmatpush3.bf16.msra.mxu1 %v323_v29 }
 0x110   :  { %v127_v30 = vpop.f32.mrb[0].mxu0 }
 0x111   :  { %v131_v31 = vmax.f32 %v127_v30, 0.0  ;;  %v262_v32 = vpop.f32.mrb[1].mxu0 }
 0x113   :  { %296 = vmatmul.mubr.f32.vlgmr.msra.gmra.mrb[0].mxu1 %v131_v31 }
 0x1e6   :  { %v214_v33 = vpop.f32.mrb[0].mxu1 }
 0x1e7   :  { %218 = vst [vmem:[#allocation8] sm:$0xff] %v214_v33  ;;  %v297_v34 = vpop.f32.mrb[1].mxu1 }
 0x1e8   :  { %411 = shalt.err (!%p408_p0)
}
 0x1e9   :  { %s412_s25 = scalar_lea.hbm %s514_s3, 128 }
 0x1ea   :  { %p413_p1 = scmp.ne.s32.totalorder %s514_s3, %s412_s25  ;;  %p416_p2 = scmp.lt.u32.totalorder %s412_s25, %s514_s3 }
 0x1ec   :  { %p418_p3 = pnand %p416_p2, %p413_p1 }
 0x1ee   :  { %421 = shalt.err (!%p418_p3)
}
 0x1ef   :  { %228 = dma.vmem_to_hbm [thread:$0]  %s226_s21, 128, %s514_s3, [#allocation4]  }
 0x1f0   :  { %426 = dma.done.wait [#allocation4], 128  }
 0x1f1   :  { %427 = vsyncadd [#allocation4], 4294967168 }
 0x1f2   :  { %232 = vsyncpa [#allocation3], 1 }
 0x1f3   :  { %233 = vsyncpa [#allocation6], 1 }
 0x1f4   :  { %234 = vsyncpa [#allocation4], 1 }

</bundles_post_ra>
